<compile_context>
chip_gen: v6e
topology: v6e:2x2x1
jax: 0.10.0
libtpu: 0.0.40
codegen_flags: <defaults>
</compile_context>

<pallas_src>
import functools

import jax
import jax.numpy as jnp
from jax.experimental import pallas as pl
from jax.experimental.pallas import tpu as pltpu


def _mixer_kernel(x_ref, wt_ref, bt_ref, w1_ref, b1_ref, w2_ref, b2_ref,
                  o_ref, *, bb, s, f):
    """One grid step: `bb` whole batch elements, laid out as (bb*s, f) rows."""
    in_dtype = x_ref.dtype
    x_rows = x_ref[...]                              # (bb*s, f)

    # ---- Time mixing (BN folded into wt/bt; dropout = identity in eval) ----
    if bb == 1:
        # Plain 2-D matmul: z = Wt'(s,s) @ X(s,f), f32 accumulation.
        zt = jnp.dot(wt_ref[...], x_rows, preferred_element_type=jnp.float32)
        zt = jnp.maximum(zt + bt_ref[...], 0.0)      # bt is (s,1): per-row bias
        x2 = x_rows.astype(jnp.float32) + zt         # residual, (s, f)
    else:
        # Batched over the bb batch elements in this block. The leading-dim
        # reshape is free because s % 8 == 0 keeps the (8,128) tiling intact.
        x3 = x_rows.reshape(bb, s, f)                # (bb, s, f)
        wt_b = jnp.broadcast_to(wt_ref[...], (bb, s, s))
        zt = jax.lax.dot_general(
            wt_b, x3,
            dimension_numbers=(((2,), (1,)), ((0,), (0,))),
            preferred_element_type=jnp.float32)      # (bb, s, f)
        zt = jnp.maximum(zt + bt_ref[...], 0.0)      # (s,1) broadcasts over b,f
        x2 = (x3.astype(jnp.float32) + zt).reshape(bb * s, f)

    # ---- Feature mixing (BN folded into w1/b1; dropouts = identity) --------
    # (bb*s, f) @ (f, Hp) with Hp padded to a multiple of 128 -> lane-dense h.
    h = jnp.dot(x2.astype(in_dtype), w1_ref[...],
                preferred_element_type=jnp.float32)
    h = jnp.maximum(h + b1_ref[...], 0.0)            # b1 is a (1, Hp) lane row
    z2 = jnp.dot(h.astype(in_dtype), w2_ref[...],
                 preferred_element_type=jnp.float32)  # (bb*s, f)
    o_ref[...] = (x2 + z2 + b2_ref[...]).astype(o_ref.dtype)


def _pick_batch_block(B, S, F, itemsize):
    """Batch elements per grid step: ~256KB slabs, >=2 grid steps, 8-row tiles."""
    target_bytes = 256 * 1024
    cap = max(1, target_bytes // max(1, S * F * itemsize))
    if B >= 2:
        cap = min(cap, (B + 1) // 2)   # keep >= 2 grid steps (v7x megacore)
    cap = min(cap, B)
    for bb in range(cap, 0, -1):
        if B % bb == 0 and ((bb * S) % 8 == 0 or bb == B):
            return bb
    return B


def mixer_layer_forward(x, params, *, eps=1e-5):
    """Eval-mode MixerLayer forward on x: (B, S, F)."""
    B, S, F = x.shape
    H = params["w1"].shape[1]
    f32 = jnp.float32

    for k in ("bn_t_gamma", "bn_t_beta", "bn_t_mean", "bn_t_var",
              "bn_f_gamma", "bn_f_beta", "bn_f_mean", "bn_f_var"):
        assert params[k].shape == (1,), "BatchNorm2d(1) fold assumes scalar stats"

    # ---- Fold time-mixer BatchNorm (running stats) into the time Linear ----
    scale_t = params["bn_t_gamma"][0] / jnp.sqrt(params["bn_t_var"][0] + eps)
    shift_t = params["bn_t_beta"][0] - params["bn_t_mean"][0] * scale_t
    wt = params["wt"].astype(f32)                    # (S, S), torch (out, in)
    wt_fold = scale_t * wt
    bt_fold = params["bt"].astype(f32) + shift_t * jnp.sum(wt, axis=1)   # (S,)

    # ---- Fold feat-mixer BatchNorm into lin_1 -------------------------------
    scale_f = params["bn_f_gamma"][0] / jnp.sqrt(params["bn_f_var"][0] + eps)
    shift_f = params["bn_f_beta"][0] - params["bn_f_mean"][0] * scale_f
    w1 = params["w1"].astype(f32)                    # (F, H) math layout
    w1_fold = scale_f * w1
    b1_fold = params["b1"].astype(f32) + shift_f * jnp.sum(w1, axis=0)   # (H,)
    w2 = params["w2"].astype(f32)                    # (H, F) math layout
    b2 = params["b2"].astype(f32)                    # (F,)

    # Zero-pad hidden dim to a multiple of 128 for lane-dense intermediates.
    Hp = ((H + 127) // 128) * 128
    if Hp != H:
        w1_fold = jnp.pad(w1_fold, ((0, 0), (0, Hp - H)))
        b1_fold = jnp.pad(b1_fold, (0, Hp - H))
        w2 = jnp.pad(w2, ((0, Hp - H), (0, 0)))

    wt_k = wt_fold.astype(x.dtype)                   # MXU inputs in x.dtype
    w1_k = w1_fold.astype(x.dtype)
    w2_k = w2.astype(x.dtype)
    bt_k = bt_fold.reshape(S, 1).astype(f32)         # per-sublane-row bias
    b1_k = b1_fold.reshape(1, Hp).astype(f32)        # lane-aligned row bias
    b2_k = b2.reshape(1, F).astype(f32)              # lane-aligned row bias

    bb = _pick_batch_block(B, S, F, x.dtype.itemsize)
    nb = B // bb
    rows = bb * S

    x_rows = x.reshape(B * S, F)                     # free leading-dim merge

    resident = pl.BlockSpec(memory_space=pltpu.MemorySpace.VMEM)
    kernel = functools.partial(_mixer_kernel, bb=bb, s=S, f=F)

    out_rows = pl.pallas_call(
        kernel,
        out_shape=jax.ShapeDtypeStruct((B * S, F), x.dtype),
        grid=(nb,),
        in_specs=[
            pl.BlockSpec((rows, F), lambda i: (i, 0)),   # activations, pipelined
            resident,                                    # Wt'
            resident,                                    # bt'
            resident,                                    # W1' (F, Hp)
            resident,                                    # b1'
            resident,                                    # W2  (Hp, F)
            resident,                                    # b2
        ],
        out_specs=pl.BlockSpec((rows, F), lambda i: (i, 0)),
        compiler_params=pltpu.CompilerParams(
            dimension_semantics=("parallel",)),
    )(x_rows, wt_k, bt_k, w1_k, b1_k, w2_k, b2_k)

    return out_rows.reshape(B, S, F)


if __name__ == "__main__":
    # Small shapes consistent with MixerLayer(input_length=S, no_feats=F,
    # feat_mixing_hidden_channels=H): x is (B, S, F).  B=4 exercises the
    # batched (bb=2, grid=(2,)) code path.
    B, S, F, H = 4, 16, 32, 64

    keys = jax.random.split(jax.random.PRNGKey(0), 16)
    x = jax.random.normal(keys[0], (B, S, F), dtype=jnp.float32)

    wt_b = 1.0 / (S ** 0.5)
    w1_b = 1.0 / (F ** 0.5)
    w2_b = 1.0 / (H ** 0.5)
    params = dict(
        # TimeMixer Linear(S -> S), PyTorch weight layout (out, in)
        wt=jax.random.uniform(keys[1], (S, S), minval=-wt_b, maxval=wt_b),
        bt=jax.random.uniform(keys[2], (S,), minval=-wt_b, maxval=wt_b),
        # FeatMixer lin_1 (math layout F -> H) and lin_2 (H -> F)
        w1=jax.random.uniform(keys[3], (F, H), minval=-w1_b, maxval=w1_b),
        b1=jax.random.uniform(keys[4], (H,), minval=-w1_b, maxval=w1_b),
        w2=jax.random.uniform(keys[5], (H, F), minval=-w2_b, maxval=w2_b),
        b2=jax.random.uniform(keys[6], (F,), minval=-w2_b, maxval=w2_b),
        # Non-trivial eval-mode BatchNorm2d(1) stats (scalar per layer)
        bn_t_gamma=jax.random.uniform(keys[7], (1,), minval=0.5, maxval=1.5),
        bn_t_beta=0.1 * jax.random.normal(keys[8], (1,)),
        bn_t_mean=0.1 * jax.random.normal(keys[9], (1,)),
        bn_t_var=jax.random.uniform(keys[10], (1,), minval=0.5, maxval=1.5),
        bn_f_gamma=jax.random.uniform(keys[11], (1,), minval=0.5, maxval=1.5),
        bn_f_beta=0.1 * jax.random.normal(keys[12], (1,)),
        bn_f_mean=0.1 * jax.random.normal(keys[13], (1,)),
        bn_f_var=jax.random.uniform(keys[14], (1,), minval=0.5, maxval=1.5),
    )

    out = jax.jit(mixer_layer_forward)(x, params)
    jax.block_until_ready(out)

    # ---- Pure-JAX eval-mode reference --------------------------------------
    eps = 1e-5
    with jax.default_matmul_precision("highest"):
        sc_t = params["bn_t_gamma"] / jnp.sqrt(params["bn_t_var"] + eps)
        sh_t = params["bn_t_beta"] - params["bn_t_mean"] * sc_t
        y1 = x * sc_t + sh_t
        z1 = jnp.einsum("ts,bsf->btf", params["wt"], y1) + params["bt"][None, :, None]
        x2 = x + jnp.maximum(z1, 0.0)                       # TimeMixer residual

        sc_f = params["bn_f_gamma"] / jnp.sqrt(params["bn_f_var"] + eps)
        sh_f = params["bn_f_beta"] - params["bn_f_mean"] * sc_f
        y2 = x2 * sc_f + sh_f
        h = jnp.maximum(jnp.einsum("bsf,fh->bsh", y2, params["w1"]) + params["b1"], 0.0)
        z2 = jnp.einsum("bsh,hf->bsf", h, params["w2"]) + params["b2"]
        ref = x2 + z2                                       # FeatMixer residual

    assert out.shape == x.shape and out.dtype == x.dtype
    assert jnp.allclose(out, ref, atol=3e-3, rtol=3e-3), "mismatch vs reference"
    print("KERNEL_OK")
</pallas_src>

<mosaic_0001>
module attributes {stable_mosaic.version = 11 : i64} {
  func.func @_mixer_kernel(%arg0: i32, %arg1: memref<32x32xf32, #tpu.memory_space<vmem>>, %arg2: memref<16x16xf32, #tpu.memory_space<vmem>>, %arg3: memref<16x1xf32, #tpu.memory_space<vmem>>, %arg4: memref<32x128xf32, #tpu.memory_space<vmem>>, %arg5: memref<1x128xf32, #tpu.memory_space<vmem>>, %arg6: memref<128x32xf32, #tpu.memory_space<vmem>>, %arg7: memref<1x32xf32, #tpu.memory_space<vmem>>, %arg8: memref<32x32xf32, #tpu.memory_space<vmem>>) attributes {dimension_semantics = [#tpu.dimension_semantics<parallel>], iteration_bounds = array<i64: 2>, scalar_prefetch = 0 : i64, scratch_operands = 0 : i64, tpu.core_type = #tpu.core_type<tc>, window_params = [{transform_indices = @transform_0, window_bounds = array<i64: 32, 32>}, {pipeline_mode = #tpu.pipeline_mode<synchronous>, transform_indices = @transform_1, window_bounds = array<i64: 16, 16>}, {pipeline_mode = #tpu.pipeline_mode<synchronous>, transform_indices = @transform_2, window_bounds = array<i64: 16, 1>}, {pipeline_mode = #tpu.pipeline_mode<synchronous>, transform_indices = @transform_3, window_bounds = array<i64: 32, 128>}, {pipeline_mode = #tpu.pipeline_mode<synchronous>, transform_indices = @transform_4, window_bounds = array<i64: 1, 128>}, {pipeline_mode = #tpu.pipeline_mode<synchronous>, transform_indices = @transform_5, window_bounds = array<i64: 128, 32>}, {pipeline_mode = #tpu.pipeline_mode<synchronous>, transform_indices = @transform_6, window_bounds = array<i64: 1, 32>}, {transform_indices = @transform_7, window_bounds = array<i64: 32, 32>}]} {
    %c0 = arith.constant 0 : index
    %c0_0 = arith.constant 0 : index
    %0 = vector.load %arg1[%c0, %c0_0] : memref<32x32xf32, #tpu.memory_space<vmem>>, vector<32x32xf32>
    %1 = vector.shape_cast %0 : vector<32x32xf32> to vector<2x16x32xf32>
    %c0_1 = arith.constant 0 : index
    %c0_2 = arith.constant 0 : index
    %2 = vector.load %arg2[%c0_1, %c0_2] : memref<16x16xf32, #tpu.memory_space<vmem>>, vector<16x16xf32>
    %3 = vector.shape_cast %2 : vector<16x16xf32> to vector<1x16x16xf32>
    %4 = vector.broadcast %3 : vector<1x16x16xf32> to vector<2x16x16xf32>
    %cst = arith.constant dense<0.000000e+00> : vector<2x16x32xf32>
    %5 = tpu.matmul %4, %1, %cst {dimension_numbers = #tpu.dot_dimension_numbers<[2], [1], [1], [2], [0, 0, 0, 1, 1, 2], [0], [0]>} : vector<2x16x16xf32>, vector<2x16x32xf32>, vector<2x16x32xf32> -> vector<2x16x32xf32>
    %c0_3 = arith.constant 0 : index
    %c0_4 = arith.constant 0 : index
    %6 = vector.load %arg3[%c0_3, %c0_4] : memref<16x1xf32, #tpu.memory_space<vmem>>, vector<16x1xf32>
    %7 = vector.shape_cast %6 : vector<16x1xf32> to vector<1x16x1xf32>
    %8 = vector.broadcast %7 : vector<1x16x1xf32> to vector<2x16x32xf32>
    %9 = arith.addf %5, %8 : vector<2x16x32xf32>
    %cst_5 = arith.constant 0.000000e+00 : f32
    %10 = vector.broadcast %cst_5 : f32 to vector<2x16x32xf32>
    %11 = arith.maximumf %9, %10 : vector<2x16x32xf32>
    %12 = arith.addf %1, %11 : vector<2x16x32xf32>
    %13 = vector.shape_cast %12 : vector<2x16x32xf32> to vector<32x32xf32>
    %c0_6 = arith.constant 0 : index
    %c0_7 = arith.constant 0 : index
    %14 = vector.load %arg4[%c0_6, %c0_7] : memref<32x128xf32, #tpu.memory_space<vmem>>, vector<32x128xf32>
    %cst_8 = arith.constant dense<0.000000e+00> : vector<32x128xf32>
    %15 = tpu.matmul %13, %14, %cst_8 {dimension_numbers = #tpu.dot_dimension_numbers<[1], [0], [0], [1], [0, 0, 1, 1], [], []>} : vector<32x32xf32>, vector<32x128xf32>, vector<32x128xf32> -> vector<32x128xf32>
    %c0_9 = arith.constant 0 : index
    %c0_10 = arith.constant 0 : index
    %16 = vector.load %arg5[%c0_9, %c0_10] : memref<1x128xf32, #tpu.memory_space<vmem>>, vector<1x128xf32>
    %17 = vector.broadcast %16 : vector<1x128xf32> to vector<32x128xf32>
    %18 = arith.addf %15, %17 : vector<32x128xf32>
    %cst_11 = arith.constant 0.000000e+00 : f32
    %19 = vector.broadcast %cst_11 : f32 to vector<32x128xf32>
    %20 = arith.maximumf %18, %19 : vector<32x128xf32>
    %c0_12 = arith.constant 0 : index
    %c0_13 = arith.constant 0 : index
    %21 = vector.load %arg6[%c0_12, %c0_13] : memref<128x32xf32, #tpu.memory_space<vmem>>, vector<128x32xf32>
    %cst_14 = arith.constant dense<0.000000e+00> : vector<32x32xf32>
    %22 = tpu.matmul %20, %21, %cst_14 {dimension_numbers = #tpu.dot_dimension_numbers<[1], [0], [0], [1], [0, 0, 1, 1], [], []>} : vector<32x128xf32>, vector<128x32xf32>, vector<32x32xf32> -> vector<32x32xf32>
    %23 = arith.addf %13, %22 : vector<32x32xf32>
    %c0_15 = arith.constant 0 : index
    %c0_16 = arith.constant 0 : index
    %24 = vector.load %arg7[%c0_15, %c0_16] : memref<1x32xf32, #tpu.memory_space<vmem>>, vector<1x32xf32>
    %25 = vector.broadcast %24 : vector<1x32xf32> to vector<32x32xf32>
    %26 = arith.addf %23, %25 : vector<32x32xf32>
    %c0_17 = arith.constant 0 : index
    %c0_18 = arith.constant 0 : index
    %27 = vector.load %arg8[%c0_17, %c0_18] : memref<32x32xf32, #tpu.memory_space<vmem>>, vector<32x32xf32>
    tpu.vector_store %arg8[%c0_17, %c0_18], %26 {strides = array<i32>} : memref<32x32xf32, #tpu.memory_space<vmem>>, vector<32x32xf32>,
    return
  }
  func.func @transform_0(%arg0: i32) -> (i32, i32) {
    %c0_i32 = arith.constant 0 : i32
    %c0_i32_0 = arith.constant 0 : i32
    return %arg0, %c0_i32 : i32, i32
  }
  func.func @transform_1(%arg0: i32) -> (i32, i32) {
    %c0_i32 = arith.constant 0 : i32
    %c0_i32_0 = arith.constant 0 : i32
    %c0_i32_1 = arith.constant 0 : i32
    return %c0_i32, %c0_i32_0 : i32, i32
  }
  func.func @transform_2(%arg0: i32) -> (i32, i32) {
    %c0_i32 = arith.constant 0 : i32
    %c0_i32_0 = arith.constant 0 : i32
    %c0_i32_1 = arith.constant 0 : i32
    return %c0_i32, %c0_i32_0 : i32, i32
  }
  func.func @transform_3(%arg0: i32) -> (i32, i32) {
    %c0_i32 = arith.constant 0 : i32
    %c0_i32_0 = arith.constant 0 : i32
    %c0_i32_1 = arith.constant 0 : i32
    return %c0_i32, %c0_i32_0 : i32, i32
  }
  func.func @transform_4(%arg0: i32) -> (i32, i32) {
    %c0_i32 = arith.constant 0 : i32
    %c0_i32_0 = arith.constant 0 : i32
    %c0_i32_1 = arith.constant 0 : i32
    return %c0_i32, %c0_i32_0 : i32, i32
  }
  func.func @transform_5(%arg0: i32) -> (i32, i32) {
    %c0_i32 = arith.constant 0 : i32
    %c0_i32_0 = arith.constant 0 : i32
    %c0_i32_1 = arith.constant 0 : i32
    return %c0_i32, %c0_i32_0 : i32, i32
  }
  func.func @transform_6(%arg0: i32) -> (i32, i32) {
    %c0_i32 = arith.constant 0 : i32
    %c0_i32_0 = arith.constant 0 : i32
    %c0_i32_1 = arith.constant 0 : i32
    return %c0_i32, %c0_i32_0 : i32, i32
  }
  func.func @transform_7(%arg0: i32) -> (i32, i32) {
    %c0_i32 = arith.constant 0 : i32
    %c0_i32_0 = arith.constant 0 : i32
    return %arg0, %c0_i32 : i32, i32
  }
}

</mosaic_0001>

<bundles_post_ra>
// kernel: mixer_layer_forward.1
= control target key start
LH: loop header
LB: loop body
LE: loop exit
PB: predicated region body
PF: predicated region fallthrough
CT: control target
= control target key end

     0   :  { %12 = vsyncpa [#allocation3], 0  ;;  %s1257_s0 = inlined_call_operand.vmem [shape: f32[64,32], index: 0, kind: input, shape index: {}]   ;;  %s1258_s1 = inlined_call_operand.vmem [shape: f32[16,16], index: 1, kind: input, shape index: {}]   ;;  %s1259_s2 = inlined_call_operand.vmem [shape: f32[16,1], index: 2, kind: input, shape index: {}]   ;;  %s1260_s3 = inlined_call_operand.vmem [shape: f32[32,128], index: 3, kind: input, shape index: {}]   ;;  %s1261_s4 = inlined_call_operand.vmem [shape: f32[1,128], index: 4, kind: input, shape index: {}]   ;;  %s1262_s5 = inlined_call_operand.vmem [shape: f32[128,32], index: 5, kind: input, shape index: {}]   ;;  %s1263_s6 = inlined_call_operand.vmem [shape: f32[1,32], index: 6, kind: input, shape index: {}]   ;;  %s1264_s7 = inlined_call_operand.hbm [shape: f32[64,32], index: 7, kind: output, shape index: {}]  }
   0x1   :  { %14 = vsyncpa [#allocation3 + $0x1], 0  ;;  %s1046_s24 = smov 0   ;;  %s1048_s25 = smov 0  }
   0x2   :  { %s1050_s26 = smov 0   ;;  %s1052_s27 = smov 0  }
   0x3 LB: > { %s1067_s28 = sadd.s32 4294967295, %s1000_s27   ;;  %s772_s29 = sadd.s32 4294967294, %s1000_s27   ;;  %s1000_s27 = sphi %s1052_s27, %s1270_s27   ;;  %s996_s26 = sphi %s1050_s26, %s1269_s26   ;;  %s992_s25 = sphi %s1048_s25, %s1268_s25   ;;  %s988_s24 = sphi %s1046_s24, %s1267_s24  }
   0x4   : > { %s1071_s30 = sadd.s32 1, %s1000_s27   ;;  %s179_s8 = sadd.s32 1, %s996_s26 }
   0x5   : > { %s176_s9 = ssub.s32 %s1000_s27, %s1071_s30  ;;  %p189_p0 = scmp.ne.s32.totalorder %s996_s26, %s992_s25 }
   0x6   : > { %p177_p1 = scmp.eq.s32.totalorder %s176_s9, 0  ;;  %p190_p2 = scmp.eq.s32.totalorder %s1067_s28, 1 }
   0x7   : > { %p195_p3 = scmp.ne.s32.totalorder %s992_s25, %s988_s24  ;;  %p196_p4 = scmp.eq.s32.totalorder %s772_s29, 1 }
   0x8   : > { %s1082_s10 = scalar_select %p177_p1, %s996_s26, %s179_s8  }
   0x9   : > { %p1084_p5 = por %p190_p2, %p189_p0  ;;  %p1088_p6 = por %p196_p4, %p195_p3 }
   0xa   : > { %p775_p7 = scmp.ge.s32.totalorder %s1000_s27, 1  ;;  %p241_p8 = scmp.lt.s32.totalorder %s1000_s27, 3 }
   0xc   : > { %p242_p9 = pnand %p775_p7, %p241_p8 }
   0xd   : > { %s777_s13 = sshll.u32 (!%p242_p9), %s1067_s28, 2  ;;  %s270_s9 = sand.u32 (!%p242_p9), 1, %s992_s25  }
   0xe   : > { %245 = sbr.rel (%p242_p9) target bundleno = 646 (0x286), region = 48  ;;  %p274_p10 = scmp.lt.s32.totalorder (!%p242_p9), %s777_s13, 7 }
   0xf   : > { %s794_s18 = sshll.u32 (!%p242_p9), %s1067_s28, 9  ;;  %s1217_s28 = scalar_lea.sflag (!%p242_p9), [#allocation3], %s270_s9 }
  0x10   : > { %s1211_s21 = scalar_lea.hbm (!%p242_p9), %s1264_s7, %s794_s18 }
  0x13   : > { %v284_v0 = vld [vmem:[%s1258_s1] sm:$0xff]  ;;  %vm298_vm0 = vcmask 130048   ;;  %v1002_v2 = vmov 0   ;;  %s1272_s13 = smov (!%p274_p10, %s777_s13), 7  ;;  %v287_v3 = vld [vmem:[%s1259_s2 + $0x8] sm:$0xff]  ;;  %v466_v9 = vld [vmem:[%s1260_s3 + $0x18] sm:$0xff] }
  0x14   : > { %v286_v1 = vld [vmem:[%s1259_s2] sm:$0xff]  ;;  %835 = vmatprep.mubr.msk.f32.mxu0 %vm298_vm0, %v284_v0  ;;  %939 = vset.pattern.permute.xlu0 %v1002_v2  ;;  %s778_s20 = sshll.u32 %s1272_s13, 3  ;;  %v285_v6 = vld [vmem:[%s1258_s1 + $0x8] sm:$0xff]  ;;  %v465_v10 = vld [vmem:[%s1260_s3 + $0x10] sm:$0xff]  ;;  %vm474_vm1 = vcmask 261120   ;;  %s776_s13 = sshll.u32 %s270_s9, 5 }
  0x15   : > { %290 = vperm.xlu0 %939, %v286_v1   ;;  %s277_s23 = scalar_lea.vmem %s1257_s0, %s778_s20  ;;  %v464_v11 = vld [vmem:[%s1260_s3 + $0x8] sm:$0xff]  ;;  %v463_v12 = vld [vmem:[%s1260_s3] sm:$0xff]  ;;  %v591_v13 = vld [vmem:[%s1262_s5 + $0x78] sm:$0xff]  ;;  %s272_s16 = scalar_lea.vmem [#allocation2], %s776_s13 }
  0x16   : > { %v1108_v4 = vld [vmem:[%s277_s23 + $0x8] sm:$0xff]  ;;  %v1110_v5 = vld [vmem:[%s277_s23] sm:$0xff]  ;;  %v1117_v7 = vld [vmem:[%s277_s23 + $0x18] sm:$0xff]  ;;  %859 = vmatprep.subr.mxu1 %v591_v13  ;;  %s710_s17 = sshll.u32 %s272_s16, 4  ;;  %s1213_s17 = int_to_ptr.vmem [resolvable:$true] %s710_s17 }
  0x17   : > { %831 = vmatprep.subr.mxu0 %v1108_v4  ;;  %v1121_v8 = vld [vmem:[%s277_s23 + $0x10] sm:$0xff]  ;;  %860 = vmatpush3.msra.mxu1 %v591_v13  ;;  %v589_v15 = vld [vmem:[%s1262_s5 + $0x68] sm:$0xff]  ;;  %v588_v16 = vld [vmem:[%s1262_s5 + $0x60] sm:$0xff]  ;;  %s940_s22 = scalar_lea.vmem %s1213_s17, 512  ;;  %s1003_s23 = smov [#allocation2]  }
  0x18   : > { %832 = vmatpush3.msra.mxu0 %v1108_v4  ;;  %v590_v14 = vld [vmem:[%s1262_s5 + $0x70] sm:$0xff]  ;;  %v587_v17 = vld [vmem:[%s1262_s5 + $0x58] sm:$0xff]  ;;  %v585_v19 = vld [vmem:[%s1262_s5 + $0x48] sm:$0xff]  ;;  %p941_p11 = scmp.ne.s32.totalorder %s1213_s17, %s940_s22  ;;  %s944_s29 = sshll.u32 %s1003_s23, 4  ;;  %s945_s29 = int_to_ptr.vmem [resolvable:$false] %s944_s29 }
  0x19   : > { %295 = vperm.xlu0 %939, %v287_v3   ;;  %833 = vmatprep.subr.mxu0 %v1110_v5  ;;  %v586_v18 = vld [vmem:[%s1262_s5 + $0x50] sm:$0xff]  ;;  %v584_v20 = vld [vmem:[%s1262_s5 + $0x40] sm:$0xff]  ;;  %v583_v21 = vld [vmem:[%s1262_s5 + $0x38] sm:$0xff]  ;;  %s946_s8 = scalar_lea.vmem %s945_s29, 1024  ;;  %p947_p0 = scmp.lt.s32.totalorder %s1213_s17, %s945_s29 }
  0x1a   : > { %834 = vmatpush3.msra.mxu0 %v1110_v5  ;;  %861 = vmatprep.subr.mxu1 %v590_v14  ;;  %v582_v22 = vld [vmem:[%s1262_s5 + $0x30] sm:$0xff]  ;;  %v581_v23 = vld [vmem:[%s1262_s5 + $0x28] sm:$0xff]  ;;  %v580_v24 = vld [vmem:[%s1262_s5 + $0x20] sm:$0xff]  ;;  %p942_p12 = pnand %p941_p11, %p1084_p5  ;;  %p948_p1 = scmp.lt.s32.totalorder %s946_s8, %s940_s22 }
  0x1b   : > { %836 = vmatmul.mubr.msk.f32.vlgmr.msra.gmra.mxu0 %vm298_vm0, %v285_v6  ;;  %838 = vmatprep.subr.mxu0 %v1117_v7  ;;  %v579_v43 = vld [vmem:[%s1262_s5 + $0x18] sm:$0xff]  ;;  %v578_v44 = vld [vmem:[%s1262_s5 + $0x10] sm:$0xff]  ;;  %v577_v45 = vld [vmem:[%s1262_s5 + $0x8] sm:$0xff] }
  0x1c   : > { %839 = vmatpush3.msra.mxu0 %v1117_v7  ;;  %842 = vmatprep.mubr.msk.f32.mxu0 %vm298_vm0, %v284_v0  ;;  %v576_v46 = vld [vmem:[%s1262_s5] sm:$0xff]  ;;  %p943_p13 = pneg %p942_p12  ;;  %p949_p2 = por %p948_p1, %p947_p0 }
  0x1d   : > { %840 = vmatprep.subr.mxu0 %v1121_v8  ;;  %862 = vmatpush3.msra.mxu1 %v590_v14  ;;  %v783_v47 = vld [vmem:[%s1261_s4] ss:$0 sm:$0xff] }
  0x1e   : > { %841 = vmatpush3.msra.mxu0 %v1121_v8  ;;  %863 = vmatprep.subr.mxu1 %v589_v15  ;;  %v788_v61 = vld [vmem:[%s1263_s6] ss:$0 sm:$0xff]  ;;  %p950_p3 = pnand %p949_p2, %p943_p13 }
  0x1f   : > { %843 = vmatmul.mubr.msk.f32.vlgmr.msra.gmra.mxu0 %vm298_vm0, %v285_v6  ;;  %845 = vmatprep.subr.mxu0 %v466_v9 }
  0x20   : > { %846 = vmatpush3.msra.mxu0 %v466_v9  ;;  %864 = vmatpush3.msra.mxu1 %v589_v15 }
  0x21   : > { %847 = vmatprep.subr.mxu0 %v465_v10  ;;  %865 = vmatprep.subr.mxu1 %v588_v16 }
  0x22   : > { %848 = vmatpush3.msra.mxu0 %v465_v10  ;;  %866 = vmatpush3.msra.mxu1 %v588_v16 }
  0x23   : > { %849 = vmatprep.subr.mxu0 %v464_v11  ;;  %867 = vmatprep.subr.mxu1 %v587_v17 }
  0x24   : > { %850 = vmatpush3.msra.mxu0 %v464_v11  ;;  %868 = vmatpush3.msra.mxu1 %v587_v17 }
  0x25   : > { %851 = vmatprep.subr.mxu0 %v463_v12  ;;  %869 = vmatprep.subr.mxu1 %v586_v18 }
  0x26   : > { %852 = vmatpush3.msra.mxu0 %v463_v12  ;;  %870 = vmatpush3.msra.mxu1 %v586_v18 }
  0x27   : > { %871 = vmatprep.subr.mxu1 %v585_v19 }
  0x28   : > { %872 = vmatpush3.msra.mxu1 %v585_v19 }
  0x29   : > { %873 = vmatprep.subr.mxu1 %v584_v20 }
  0x2a   : > { %874 = vmatpush3.msra.mxu1 %v584_v20 }
  0x2b   : > { %875 = vmatprep.subr.mxu1 %v583_v21 }
  0x2c   : > { %876 = vmatpush3.msra.mxu1 %v583_v21 }
  0x2d   : > { %877 = vmatprep.subr.mxu1 %v582_v22 }
  0x2e   : > { %878 = vmatpush3.msra.mxu1 %v582_v22 }
  0x2f   : > { %879 = vmatprep.subr.mxu1 %v581_v23 }
  0x30   : > { %880 = vmatpush3.msra.mxu1 %v581_v23 }
  0x31   : > { %881 = vmatprep.subr.mxu1 %v580_v24 }
  0x32   : > { %882 = vmatpush3.msra.mxu1 %v580_v24 }
  0x33   : > { %883 = vmatprep.subr.mxu1 %v579_v43 }
  0x34   : > { %884 = vmatpush3.msra.mxu1 %v579_v43 }
  0x35   : > { %885 = vmatprep.subr.mxu1 %v578_v44 }
  0x36   : > { %886 = vmatpush3.msra.mxu1 %v578_v44 }
  0x37   : > { %887 = vmatprep.subr.mxu1 %v577_v45 }
  0x38   : > { %888 = vmatpush3.msra.mxu1 %v577_v45 }
  0x39   : > { %889 = vmatprep.subr.mxu1 %v576_v46 }
  0x3a   : > { %890 = vmatpush3.msra.mxu1 %v576_v46 }
  0x90   : > { %v291_v25 = vpop.permute.xlu0 %290 }
  0x94   : > { %v296_v26 = vpop.permute.xlu0 %295 }
  0xdb   : > { %v837_v27 = vpop.f32.mrf.mxu0 }
  0xdc   : > { %v377_v28 = vadd.f32 %v837_v27, %v296_v26 }
  0xdd   : > { %v371_v29 = vpop.f32.mrf.mxu0 }
  0xde   : > { %v372_v30 = vadd.f32 %v371_v29, %v291_v25  ;;  %v456_v31 = vmax.f32 %v377_v28, 0.0 }
  0xdf   : > { %v844_v32 = vpop.f32.mrf.mxu0 }
  0xe0   : > { %v455_v33 = vmax.f32 %v372_v30, 0.0  ;;  %v452_v34 = vadd.f32 %v844_v32, %v296_v26  ;;  %v460_v38 = vadd.f32 %v456_v31, %v1108_v4 }
  0xe1   : > { %v446_v35 = vpop.f32.mrf.mxu0 }
  0xe2   : > { %v459_v36 = vadd.f32 %v455_v33, %v1110_v5  ;;  %v447_v37 = vadd.f32 %v446_v35, %v291_v25  ;;  %v458_v39 = vmax.f32 %v452_v34, 0.0 }
  0xe4   : > { %v457_v40 = vmax.f32 %v447_v37, 0.0  ;;  %853 = vmatprep.mubr.msk.f32.mxu0 %vm474_vm1, %v459_v36  ;;  %v462_v42 = vadd.f32 %v458_v39, %v1117_v7 }
  0xe5   : > { %854 = vmatmul.mubr.msk.f32.vlgmr.msra.gmra.mxu0 %vm474_vm1, %v460_v38 }
  0xe6   : > { %v461_v41 = vadd.f32 %v457_v40, %v1121_v8 }
  0xe8   : > { %856 = vmatprep.mubr.msk.f32.mxu0 %vm474_vm1, %v461_v41 }
  0xe9   : > { %857 = vmatmul.mubr.msk.f32.gmra.mxu0 %vm474_vm1, %v462_v42 }
 0x1a5   : > { %v855_v48 = vpop.f32.mrf.mxu0 }
 0x1a6   : > { %v559_v49 = vadd.f32 %v855_v48, %v783_v47 }
 0x1a7   : > { %v553_v50 = vpop.f32.mrf.mxu0 }
 0x1a8   : > { %v554_v51 = vadd.f32 %v783_v47, %v553_v50  ;;  %v573_v54 = vmax.f32 %v559_v49, 0.0 }
 0x1a9   : > { %v858_v52 = vpop.f32.mrf.mxu0 }
 0x1aa   : > { %v572_v53 = vmax.f32 %v554_v51, 0.0  ;;  %v569_v55 = vadd.f32 %v858_v52, %v783_v47 }
 0x1ab   : > { %v563_v56 = vpop.f32.mrf.mxu0 }
 0x1ac   : > { %v564_v57 = vadd.f32 %v783_v47, %v563_v56  ;;  %891 = vmatprep.mubr.f32.mxu1 %v572_v53  ;;  %v575_v59 = vmax.f32 %v569_v55, 0.0 }
 0x1ad   : > { %892 = vmatmul.mubr.f32.vlgmr.msra.gmra.mxu1 %v573_v54 }
 0x1ae   : > { %v574_v58 = vmax.f32 %v564_v57, 0.0 }
 0x1b0   : > { %894 = vmatprep.mubr.f32.mxu1 %v574_v58 }
 0x1b1   : > { %895 = vmatmul.mubr.f32.gmra.mxu1 %v575_v59 }
 0x26d   : > { %v893_v60 = vpop.f32.mrf.mxu1 }
 0x26e   : > { %v678_v62 = vadd.f32 %v893_v60, %v460_v38 }
 0x26f   : > { %v658_v63 = vpop.f32.mrf.mxu1 }
 0x270   : > { %v689_v0 = vadd.f32 %v788_v61, %v678_v62  ;;  %v677_v1 = vadd.f32 %v658_v63, %v459_v36 }
 0x271   : > { %v896_v2 = vpop.f32.mrf.mxu1 }
 0x272   : > { %693 = vst.msk [vmem:[%s272_s16 + $0x8] sm:$0xff] %vm474_vm1, %v689_v0  ;;  %v688_v3 = vadd.f32 %v788_v61, %v677_v1  ;;  %v680_v4 = vadd.f32 %v896_v2, %v462_v42 }
 0x273   : > { %v668_v5 = vpop.f32.mrf.mxu1 }
 0x274   : > { %692 = vst.msk [vmem:[%s272_s16] sm:$0xff] %vm474_vm1, %v688_v3  ;;  %v691_v6 = vadd.f32 %v788_v61, %v680_v4  ;;  %v679_v7 = vadd.f32 %v668_v5, %v461_v41 }
 0x276   : > { %695 = vst.msk [vmem:[%s272_s16 + $0x18] sm:$0xff] %vm474_vm1, %v691_v6  ;;  %v690_v8 = vadd.f32 %v788_v61, %v679_v7 }
 0x278   : > { %694 = vst.msk [vmem:[%s272_s16 + $0x10] sm:$0xff] %vm474_vm1, %v690_v8 }
 0x279   : > { %953 = shalt.err (!%p950_p3)
}
 0x27a   : > { %s954_s9 = scalar_lea.hbm %s1211_s21, 512  ;;  %s958_s15 = scalar_lea.hbm %s1264_s7, 1024 }
 0x27b   : > { %p955_p4 = scmp.ne.s32.totalorder %s1211_s21, %s954_s9  ;;  %p959_p9 = scmp.lt.s32.totalorder %s1211_s21, %s1264_s7 }
 0x27c   : > { %p960_p10 = scmp.lt.s32.totalorder %s958_s15, %s954_s9 }
 0x27d   : > { %p956_p7 = pnand %p955_p4, %p1084_p5 }
 0x27e   : > { %p961_p11 = por %p960_p10, %p959_p9 }
 0x27f   : > { %p957_p8 = pneg %p956_p7 }
 0x281   : > { %p962_p12 = pnand %p961_p11, %p957_p8 }
 0x283   : > { %965 = shalt.err (!%p962_p12)
}
 0x284   : > { %s1004_s19 = smov 128   ;;  %s1005_s20 = smov 8  }
 0x285   : > { %897 = dma.vmem_to_hbm [thread:$0]  (%p1084_p5), %s1213_s17, 512, %s1211_s21, %s1217_s28, %s1004_s19, %s1004_s19, %s1005_s20  }
 0x286 PF: > { %p903_p13 = scmp.ge.s32.totalorder %s1000_s27, 2  ;;  %s725_s22 = sand.u32 1, %s988_s24  }
 0x287   : > { %s726_s23 = scalar_lea.sflag [#allocation3], %s725_s22 }
 0x288   : > { %p900_p0 = pnand %p903_p13, %p1088_p6 }
 0x28a   : > { %p901_p1 = pneg %p900_p0 }
 0x28c   : > { %983 = dma.done.wait (%p901_p1), %s726_s23, 512  }
 0x28d   : > { %985 = vsyncadd (%p901_p1), %s726_s23, 4294966784  ;;  %p17_p2 = scmp.ge.s32.totalorder %s1071_s30, 4   ;;  %s1267_s24 = smov %s992_s25 }
 0x28e   : > { %s1268_s25 = smov %s996_s26  ;;  %s1269_s26 = smov %s1082_s10 }
 0x28f   : > { %s1270_s27 = smov %s1071_s30  ;;  %19 = sbr.rel (!%p17_p2) target bundleno = 3 (0x3), region = 83 }
 0x294   :  { %731 = vsyncpa [#allocation3], 1 }
 0x295   :  { %733 = vsyncpa [#allocation3 + $0x1], 1 }

</bundles_post_ra>
